<compile_context>
chip_gen: v5e
topology: v5e:2x2
jax: 0.10.0
libtpu: 0.0.40
codegen_flags: <defaults>
</compile_context>

<pallas_src>
import functools

import jax
import jax.numpy as jnp
from jax import lax
from jax.experimental import pallas as pl
from jax.experimental.pallas import tpu as pltpu

LEAKY_SLOPE = 0.2
BN_EPS = 1e-5


def _leaky(x):
    return jnp.where(x >= 0, x, LEAKY_SLOPE * x)


def _vmem_capacity_bytes():
    """Trace-time VMEM capacity query with a safe fallback."""
    try:
        return int(pltpu.get_tpu_info().vmem_capacity_bytes)
    except Exception:
        return 128 << 20  # assume v5e/v6e-class VMEM if the query fails


def _stats_kernel(x_ref, w1_ref, b1_ref, w2_ref, sum_ref, ssq_ref, *, tp):
    """Pass 1: per-sample partial sums / sums-of-squares of h2 = conv2(lrelu(conv1(x))).

    Accumulation is done as lane-aligned (ndf2, 128) VALU adds (no in-kernel
    cross-lane reduction); padded pixel columns are NOT masked here -- they
    are corrected analytically in the wrapper.
    """
    # Per-sample accumulator: init at the first pixel tile of each sample.
    @pl.when(pl.program_id(1) == 0)
    def _():
        sum_ref[...] = jnp.zeros_like(sum_ref)
        ssq_ref[...] = jnp.zeros_like(ssq_ref)

    x = x_ref[0]                                                         # (C, TP)
    h1 = _leaky(jnp.dot(w1_ref[...], x, preferred_element_type=jnp.float32)
                + b1_ref[...])                                           # (ndf, TP) f32
    h2 = jnp.dot(w2_ref[...], h1.astype(w2_ref.dtype),
                 preferred_element_type=jnp.float32)                     # (ndf2, TP) f32

    ndf2 = h2.shape[0]
    acc_s = jnp.zeros((ndf2, 128), jnp.float32)
    acc_q = jnp.zeros((ndf2, 128), jnp.float32)
    for k in range(tp // 128):                  # static, lane-aligned slices -> VALU only
        blk = h2[:, k * 128:(k + 1) * 128]
        acc_s = acc_s + blk
        acc_q = acc_q + blk * blk
    sum_ref[0] = sum_ref[0] + acc_s
    ssq_ref[0] = ssq_ref[0] + acc_q


def _apply_kernel(x_ref, w1_ref, b1_ref, w2_ref, scale_ref, shift_ref, w3_ref,
                  out_ref):
    """Pass 2: recompute conv1+conv2, folded BN, LeakyReLU, conv3 (MXU, lane-dense out)."""
    x = x_ref[0]                                                         # (C, TP)
    h1 = _leaky(jnp.dot(w1_ref[...], x, preferred_element_type=jnp.float32)
                + b1_ref[...])                                           # (ndf, TP)
    h2 = jnp.dot(w2_ref[...], h1.astype(w2_ref.dtype),
                 preferred_element_type=jnp.float32)                     # (ndf2, TP)
    h3 = _leaky(h2 * scale_ref[...] + shift_ref[...])                    # (ndf2, TP)
    # conv3 (ndf2 -> 1) as an M=1 matmul on the lightly-loaded MXU slot.
    out_ref[0] = jnp.dot(w3_ref[...], h3, preferred_element_type=jnp.float32)  # (1, TP)


def pixel_discriminator(x_nchw, w1, b1, w2, gamma, beta, w3, *, use_bf16=False):
    """Forward pass of PixelDiscriminator.

    x_nchw: (N, Cin, H, W) f32
    w1:     (ndf, Cin)   conv1 weight (PyTorch (ndf, Cin, 1, 1) squeezed)
    b1:     (ndf,)       conv1 bias
    w2:     (ndf2, ndf)  conv2 weight (no bias; BatchNorm follows)
    gamma:  (ndf2,)      BN weight
    beta:   (ndf2,)      BN bias
    w3:     (1, ndf2)    conv3 weight (no bias)
    returns (N, 1, H, W) f32
    """
    N, C, H, W = x_nchw.shape
    HW = H * W
    ndf = w1.shape[0]
    ndf2 = w2.shape[0]

    # --- generation-aware tile size + VMEM limit ---------------------------------
    vmem_cap = _vmem_capacity_bytes()
    tp_cap = 8192 if vmem_cap <= (64 << 20) else 16384       # v7x vs v5e/v6e
    TP = min(tp_cap, ((HW + 127) // 128) * 128)               # lane-dense, big tiles
    HWp = ((HW + TP - 1) // TP) * TP
    n_tiles = HWp // TP
    vmem_limit = min(int(0.75 * vmem_cap), 100 << 20)

    mm_dtype = jnp.bfloat16 if use_bf16 else jnp.float32

    x3 = x_nchw.reshape(N, C, HW).astype(jnp.float32)
    if HWp != HW:
        x3 = jnp.pad(x3, ((0, 0), (0, 0), (0, HWp - HW)))
    x3 = x3.astype(mm_dtype)
    w1m = w1.astype(mm_dtype)
    w2m = w2.astype(mm_dtype)

    b1c = b1.reshape(ndf, 1).astype(jnp.float32)
    w3r = w3.reshape(1, ndf2).astype(jnp.float32)

    m_total = N * HW
    esz = 2 if use_bf16 else 4

    # ---------------- pass 1: BN statistics (per-sample partial sums) ----------------
    flops1 = 2 * N * HWp * (C * ndf + ndf * ndf2) + 3 * N * HWp * ndf2
    bytes1 = esz * (N * C * HWp + ndf * C + ndf2 * ndf) + 4 * (ndf + 2 * N * ndf2 * 128)

    sums_p, ssqs_p = pl.pallas_call(
        functools.partial(_stats_kernel, tp=TP),
        out_shape=(jax.ShapeDtypeStruct((N, ndf2, 128), jnp.float32),
                   jax.ShapeDtypeStruct((N, ndf2, 128), jnp.float32)),
        grid_spec=pltpu.PrefetchScalarGridSpec(
            num_scalar_prefetch=0,
            grid=(N, n_tiles),
            in_specs=[
                pl.BlockSpec((1, C, TP), lambda n, p: (n, 0, p)),     # x tile
                pl.BlockSpec((ndf, C), lambda n, p: (0, 0)),          # w1 (resident)
                pl.BlockSpec((ndf, 1), lambda n, p: (0, 0)),          # b1
                pl.BlockSpec((ndf2, ndf), lambda n, p: (0, 0)),       # w2
            ],
            out_specs=[
                pl.BlockSpec((1, ndf2, 128), lambda n, p: (n, 0, 0)),  # partial sum
                pl.BlockSpec((1, ndf2, 128), lambda n, p: (n, 0, 0)),  # partial sumsq
            ],
        ),
        compiler_params=pltpu.CompilerParams(
            dimension_semantics=("parallel", "arbitrary"),
            vmem_limit_bytes=vmem_limit),
        cost_estimate=pl.CostEstimate(
            flops=flops1, transcendentals=0, bytes_accessed=bytes1),
    )(x3, w1m, b1c, w2m)

    # Final reduce of the tiny partial accumulators (N * ndf2 * 128 elements) in XLA.
    sums = jnp.sum(sums_p, axis=(0, 2))                        # (ndf2,)
    ssqs = jnp.sum(ssqs_p, axis=(0, 2))                        # (ndf2,)

    # Analytic correction for padded pixel columns: each contributes the
    # constant h2_pad = w2 @ leaky(b1).
    if HWp != HW:
        pad_cols = float(N * (HWp - HW))
        h2_pad = w2.astype(jnp.float32) @ _leaky(b1.astype(jnp.float32))   # (ndf2,)
        sums = sums - pad_cols * h2_pad
        ssqs = ssqs - pad_cols * (h2_pad * h2_pad)

    # Fold BN (training-mode batch stats, biased variance) into scale/shift.
    # NOTE: E[x^2]-E[x]^2 in f32; fine at these scales (documented tolerance).
    mean = sums / float(m_total)
    var = jnp.maximum(ssqs / float(m_total) - mean * mean, 0.0)
    inv_std = lax.rsqrt(var + BN_EPS)
    scale = (gamma.astype(jnp.float32) * inv_std).reshape(ndf2, 1)
    shift = (beta.astype(jnp.float32) - mean * gamma.astype(jnp.float32)
             * inv_std).reshape(ndf2, 1)

    # ---------------- pass 2: normalize + LeakyReLU + conv3 ----------------
    flops2 = 2 * N * HWp * (C * ndf + ndf * ndf2 + ndf2)
    bytes2 = esz * (N * C * HWp + ndf * C + ndf2 * ndf) \
        + 4 * (N * HWp + ndf + 3 * ndf2)

    out3 = pl.pallas_call(
        _apply_kernel,
        out_shape=jax.ShapeDtypeStruct((N, 1, HWp), jnp.float32),
        grid_spec=pltpu.PrefetchScalarGridSpec(
            num_scalar_prefetch=0,
            grid=(N, n_tiles),
            in_specs=[
                pl.BlockSpec((1, C, TP), lambda n, p: (n, 0, p)),     # x tile
                pl.BlockSpec((ndf, C), lambda n, p: (0, 0)),          # w1
                pl.BlockSpec((ndf, 1), lambda n, p: (0, 0)),          # b1
                pl.BlockSpec((ndf2, ndf), lambda n, p: (0, 0)),       # w2
                pl.BlockSpec((ndf2, 1), lambda n, p: (0, 0)),         # BN scale
                pl.BlockSpec((ndf2, 1), lambda n, p: (0, 0)),         # BN shift
                pl.BlockSpec((1, ndf2), lambda n, p: (0, 0)),         # w3 (row, MXU)
            ],
            out_specs=pl.BlockSpec((1, 1, TP), lambda n, p: (n, 0, p)),
        ),
        compiler_params=pltpu.CompilerParams(
            dimension_semantics=("parallel", "parallel"),
            vmem_limit_bytes=vmem_limit),
        cost_estimate=pl.CostEstimate(
            flops=flops2, transcendentals=0, bytes_accessed=bytes2),
    )(x3, w1m, b1c, w2m, scale, shift, w3r)

    # Padded pixel columns carry garbage (bias/shift propagate) -> slice them off.
    return out3[:, :, :HW].reshape(N, 1, H, W)


if __name__ == "__main__":
    # Small shapes consistent with the module.
    N, Cin, H, W = 2, 4, 16, 16
    ndf = 16            # "number of filters in the last conv layer" (kept small)
    ndf2 = 2 * ndf

    key = jax.random.PRNGKey(0)
    kx, k1, kb1, k2, kg, kb, k3 = jax.random.split(key, 7)

    x = jax.random.normal(kx, (N, Cin, H, W), dtype=jnp.float32)

    # Parameters stored in PyTorch conv layout (Cout, Cin) for 1x1 kernels.
    w1 = jax.random.normal(k1, (ndf, Cin), dtype=jnp.float32) * 0.1
    b1 = jax.random.normal(kb1, (ndf,), dtype=jnp.float32) * 0.1
    w2 = jax.random.normal(k2, (ndf2, ndf), dtype=jnp.float32) * 0.1
    gamma = 1.0 + 0.1 * jax.random.normal(kg, (ndf2,), dtype=jnp.float32)
    beta = 0.1 * jax.random.normal(kb, (ndf2,), dtype=jnp.float32)
    w3 = jax.random.normal(k3, (1, ndf2), dtype=jnp.float32) * 0.1

    out = pixel_discriminator(x, w1, b1, w2, gamma, beta, w3)
    out = jax.block_until_ready(out)

    # Pure-JAX reference (same math, outside Pallas).
    x2 = x.reshape(N, Cin, H * W)
    h1 = jnp.einsum('oc,ncp->nop', w1, x2) + b1.reshape(1, ndf, 1)
    h1 = jnp.where(h1 >= 0, h1, LEAKY_SLOPE * h1)
    h2 = jnp.einsum('oc,ncp->nop', w2, h1)
    mu = h2.mean(axis=(0, 2), keepdims=True)
    var = ((h2 - mu) ** 2).mean(axis=(0, 2), keepdims=True)   # biased variance (training mode)
    h2n = (h2 - mu) * lax.rsqrt(var + BN_EPS) * gamma.reshape(1, ndf2, 1) \
          + beta.reshape(1, ndf2, 1)
    h3 = jnp.where(h2n >= 0, h2n, LEAKY_SLOPE * h2n)
    ref = jnp.einsum('oc,ncp->nop', w3, h3).reshape(N, 1, H, W)

    assert out.shape == (N, 1, H, W), out.shape
    assert jnp.allclose(out, ref, atol=3e-4, rtol=3e-4), "mismatch vs reference"

    print("KERNEL_OK")
</pallas_src>

<mosaic_0001>
module attributes {stable_mosaic.version = 11 : i64} {
  func.func @_stats_kernel(%arg0: i32, %arg1: i32, %arg2: memref<1x4x256xf32, #tpu.memory_space<vmem>>, %arg3: memref<16x4xf32, #tpu.memory_space<vmem>>, %arg4: memref<16x1xf32, #tpu.memory_space<vmem>>, %arg5: memref<32x16xf32, #tpu.memory_space<vmem>>, %arg6: memref<1x32x128xf32, #tpu.memory_space<vmem>>, %arg7: memref<1x32x128xf32, #tpu.memory_space<vmem>>) attributes {dimension_semantics = [#tpu.dimension_semantics<parallel>, #tpu.dimension_semantics<arbitrary>], iteration_bounds = array<i64: 2, 1>, scalar_prefetch = 0 : i64, scratch_operands = 0 : i64, tpu.core_type = #tpu.core_type<tc>, window_params = [{transform_indices = @transform_0, window_bounds = array<i64: 1, 4, 256>}, {pipeline_mode = #tpu.pipeline_mode<synchronous>, transform_indices = @transform_1, window_bounds = array<i64: 16, 4>}, {pipeline_mode = #tpu.pipeline_mode<synchronous>, transform_indices = @transform_2, window_bounds = array<i64: 16, 1>}, {pipeline_mode = #tpu.pipeline_mode<synchronous>, transform_indices = @transform_3, window_bounds = array<i64: 32, 16>}, {transform_indices = @transform_4, window_bounds = array<i64: 1, 32, 128>}, {transform_indices = @transform_5, window_bounds = array<i64: 1, 32, 128>}]} {
    %c0_i32 = arith.constant 0 : i32
    %0 = arith.cmpi eq, %arg1, %c0_i32 : i32
    %1 = arith.extui %0 : i1 to i32
    %c0_i32_0 = arith.constant 0 : i32
    %2 = arith.cmpi ne, %1, %c0_i32_0 : i32
    scf.if %2 {
      %cst_26 = arith.constant 0.000000e+00 : f32
      %39 = vector.broadcast %cst_26 : f32 to vector<1x32x128xf32>
      %c0_27 = arith.constant 0 : index
      %c0_28 = arith.constant 0 : index
      %c0_29 = arith.constant 0 : index
      %40 = vector.load %arg6[%c0_27, %c0_28, %c0_29] : memref<1x32x128xf32, #tpu.memory_space<vmem>>, vector<1x32x128xf32>
      tpu.vector_store %arg6[%c0_27, %c0_28, %c0_29], %39 {strides = array<i32>} : memref<1x32x128xf32, #tpu.memory_space<vmem>>, vector<1x32x128xf32>,
      %cst_30 = arith.constant 0.000000e+00 : f32
      %41 = vector.broadcast %cst_30 : f32 to vector<1x32x128xf32>
      %c0_31 = arith.constant 0 : index
      %c0_32 = arith.constant 0 : index
      %c0_33 = arith.constant 0 : index
      %42 = vector.load %arg7[%c0_31, %c0_32, %c0_33] : memref<1x32x128xf32, #tpu.memory_space<vmem>>, vector<1x32x128xf32>
      tpu.vector_store %arg7[%c0_31, %c0_32, %c0_33], %41 {strides = array<i32>} : memref<1x32x128xf32, #tpu.memory_space<vmem>>, vector<1x32x128xf32>,
    } else {
    }
    %c0 = arith.constant 0 : index
    %c0_1 = arith.constant 0 : index
    %c0_2 = arith.constant 0 : index
    %3 = vector.load %arg2[%c0, %c0_1, %c0_2] : memref<1x4x256xf32, #tpu.memory_space<vmem>>, vector<1x4x256xf32>
    %4 = vector.shape_cast %3 : vector<1x4x256xf32> to vector<4x256xf32>
    %c0_3 = arith.constant 0 : index
    %c0_4 = arith.constant 0 : index
    %5 = vector.load %arg3[%c0_3, %c0_4] : memref<16x4xf32, #tpu.memory_space<vmem>>, vector<16x4xf32>
    %cst = arith.constant dense<0.000000e+00> : vector<16x256xf32>
    %6 = tpu.matmul %5, %4, %cst {dimension_numbers = #tpu.dot_dimension_numbers<[1], [0], [0], [1], [0, 0, 1, 1], [], []>} : vector<16x4xf32>, vector<4x256xf32>, vector<16x256xf32> -> vector<16x256xf32>
    %c0_5 = arith.constant 0 : index
    %c0_6 = arith.constant 0 : index
    %7 = vector.load %arg4[%c0_5, %c0_6] : memref<16x1xf32, #tpu.memory_space<vmem>>, vector<16x1xf32>
    %8 = vector.broadcast %7 : vector<16x1xf32> to vector<16x256xf32>
    %9 = arith.addf %6, %8 : vector<16x256xf32>
    %cst_7 = arith.constant 0.000000e+00 : f32
    %10 = vector.broadcast %cst_7 : f32 to vector<16x256xf32>
    %11 = arith.cmpf oge, %9, %10 : vector<16x256xf32>
    %cst_8 = arith.constant 2.000000e-01 : f32
    %12 = vector.broadcast %cst_8 : f32 to vector<16x256xf32>
    %13 = arith.mulf %12, %9 : vector<16x256xf32>
    %14 = arith.select %11, %9, %13 : vector<16x256xi1>, vector<16x256xf32>
    %c0_9 = arith.constant 0 : index
    %c0_10 = arith.constant 0 : index
    %15 = vector.load %arg5[%c0_9, %c0_10] : memref<32x16xf32, #tpu.memory_space<vmem>>, vector<32x16xf32>
    %cst_11 = arith.constant dense<0.000000e+00> : vector<32x256xf32>
    %16 = tpu.matmul %15, %14, %cst_11 {dimension_numbers = #tpu.dot_dimension_numbers<[1], [0], [0], [1], [0, 0, 1, 1], [], []>} : vector<32x16xf32>, vector<16x256xf32>, vector<32x256xf32> -> vector<32x256xf32>
    %cst_12 = arith.constant 0.000000e+00 : f32
    %17 = vector.broadcast %cst_12 : f32 to vector<32x128xf32>
    %cst_13 = arith.constant 0.000000e+00 : f32
    %18 = vector.broadcast %cst_13 : f32 to vector<32x128xf32>
    %19 = vector.extract_strided_slice %16 {offsets = [0, 0], sizes = [32, 128], strides = [1, 1]} : vector<32x256xf32> to vector<32x128xf32>
    %20 = arith.addf %17, %19 : vector<32x128xf32>
    %21 = arith.mulf %19, %19 : vector<32x128xf32>
    %22 = arith.addf %18, %21 : vector<32x128xf32>
    %23 = vector.extract_strided_slice %16 {offsets = [0, 128], sizes = [32, 128], strides = [1, 1]} : vector<32x256xf32> to vector<32x128xf32>
    %24 = arith.addf %20, %23 : vector<32x128xf32>
    %25 = arith.mulf %23, %23 : vector<32x128xf32>
    %26 = arith.addf %22, %25 : vector<32x128xf32>
    %c0_14 = arith.constant 0 : index
    %c0_15 = arith.constant 0 : index
    %c0_16 = arith.constant 0 : index
    %27 = vector.load %arg6[%c0_14, %c0_15, %c0_16] : memref<1x32x128xf32, #tpu.memory_space<vmem>>, vector<1x32x128xf32>
    %28 = vector.shape_cast %27 : vector<1x32x128xf32> to vector<32x128xf32>
    %29 = arith.addf %28, %24 : vector<32x128xf32>
    %c0_17 = arith.constant 0 : index
    %c0_18 = arith.constant 0 : index
    %c0_19 = arith.constant 0 : index
    %30 = vector.load %arg6[%c0_17, %c0_18, %c0_19] : memref<1x32x128xf32, #tpu.memory_space<vmem>>, vector<1x32x128xf32>
    %31 = vector.shape_cast %30 : vector<1x32x128xf32> to vector<32x128xf32>
    %32 = vector.shape_cast %29 : vector<32x128xf32> to vector<1x32x128xf32>
    tpu.vector_store %arg6[%c0_17, %c0_18, %c0_19], %32 {strides = array<i32>} : memref<1x32x128xf32, #tpu.memory_space<vmem>>, vector<1x32x128xf32>,
    %c0_20 = arith.constant 0 : index
    %c0_21 = arith.constant 0 : index
    %c0_22 = arith.constant 0 : index
    %33 = vector.load %arg7[%c0_20, %c0_21, %c0_22] : memref<1x32x128xf32, #tpu.memory_space<vmem>>, vector<1x32x128xf32>
    %34 = vector.shape_cast %33 : vector<1x32x128xf32> to vector<32x128xf32>
    %35 = arith.addf %34, %26 : vector<32x128xf32>
    %c0_23 = arith.constant 0 : index
    %c0_24 = arith.constant 0 : index
    %c0_25 = arith.constant 0 : index
    %36 = vector.load %arg7[%c0_23, %c0_24, %c0_25] : memref<1x32x128xf32, #tpu.memory_space<vmem>>, vector<1x32x128xf32>
    %37 = vector.shape_cast %36 : vector<1x32x128xf32> to vector<32x128xf32>
    %38 = vector.shape_cast %35 : vector<32x128xf32> to vector<1x32x128xf32>
    tpu.vector_store %arg7[%c0_23, %c0_24, %c0_25], %38 {strides = array<i32>} : memref<1x32x128xf32, #tpu.memory_space<vmem>>, vector<1x32x128xf32>,
    return
  }
  func.func @transform_0(%arg0: i32, %arg1: i32) -> (i32, i32, i32) {
    %c0_i32 = arith.constant 0 : i32
    %c0_i32_0 = arith.constant 0 : i32
    return %arg0, %c0_i32, %arg1 : i32, i32, i32
  }
  func.func @transform_1(%arg0: i32, %arg1: i32) -> (i32, i32) {
    %c0_i32 = arith.constant 0 : i32
    %c0_i32_0 = arith.constant 0 : i32
    %c0_i32_1 = arith.constant 0 : i32
    return %c0_i32, %c0_i32_0 : i32, i32
  }
  func.func @transform_2(%arg0: i32, %arg1: i32) -> (i32, i32) {
    %c0_i32 = arith.constant 0 : i32
    %c0_i32_0 = arith.constant 0 : i32
    %c0_i32_1 = arith.constant 0 : i32
    return %c0_i32, %c0_i32_0 : i32, i32
  }
  func.func @transform_3(%arg0: i32, %arg1: i32) -> (i32, i32) {
    %c0_i32 = arith.constant 0 : i32
    %c0_i32_0 = arith.constant 0 : i32
    %c0_i32_1 = arith.constant 0 : i32
    return %c0_i32, %c0_i32_0 : i32, i32
  }
  func.func @transform_4(%arg0: i32, %arg1: i32) -> (i32, i32, i32) {
    %c0_i32 = arith.constant 0 : i32
    %c0_i32_0 = arith.constant 0 : i32
    %c0_i32_1 = arith.constant 0 : i32
    return %arg0, %c0_i32, %c0_i32_0 : i32, i32, i32
  }
  func.func @transform_5(%arg0: i32, %arg1: i32) -> (i32, i32, i32) {
    %c0_i32 = arith.constant 0 : i32
    %c0_i32_0 = arith.constant 0 : i32
    %c0_i32_1 = arith.constant 0 : i32
    return %arg0, %c0_i32, %c0_i32_0 : i32, i32, i32
  }
}

</mosaic_0001>

<bundles_post_ra>
// kernel: tpu_custom_call.1
= control target key start
LH: loop header
LB: loop body
LE: loop exit
PB: predicated region body
PF: predicated region fallthrough
CT: control target
= control target key end

     0   :  { %s1049_s0 = inlined_call_operand.vmem [shape: f32[2,4,256], index: 0, kind: input, shape index: {}]   ;;  %s1050_s1 = inlined_call_operand.vmem [shape: f32[16,4], index: 1, kind: input, shape index: {}]   ;;  %s1051_s2 = inlined_call_operand.vmem [shape: f32[16,1], index: 2, kind: input, shape index: {}]   ;;  %s1052_s3 = inlined_call_operand.vmem [shape: f32[32,16], index: 3, kind: input, shape index: {}]   ;;  %s1053_s4 = inlined_call_operand.hbm [shape: f32[2,32,128], index: 4, kind: output, shape index: {0}]   ;;  %s1054_s5 = inlined_call_operand.hbm [shape: f32[2,32,128], index: 5, kind: output, shape index: {1}]  }
   0x1   :  { %1055 = sst [smem:[#allocation8_spill]] %s1049_s0 }
   0x2   :  { %11 = vsyncpa [#allocation3], 0 }
   0x3   :  { %13 = vsyncpa [#allocation3 + $0x1], 0 }
   0x4   :  { %14 = vsyncpa [#allocation5], 0 }
   0x5   :  { %16 = vsyncpa [#allocation5 + $0x1], 0  ;;  %s881_s18 = smov 0   ;;  %s883_s19 = smov 0  }
   0x6   :  { %s885_s20 = smov 0   ;;  %s887_s21 = smov 0  }
   0x7   :  { %s889_s22 = smov 0   ;;  %s891_s23 = smov 0  }
   0x8 LB: > { %s633_s24 = sadd.s32 4294967295, %s846_s23   ;;  %s634_s25 = sadd.s32 4294967294, %s846_s23   ;;  %s846_s23 = sphi %s891_s23, %s22_s23   ;;  %s842_s22 = sphi %s889_s22, %s1063_s22   ;;  %s838_s21 = sphi %s887_s21, %s1062_s21   ;;  %s834_s20 = sphi %s885_s20, %s1061_s20   ;;  %s830_s19 = sphi %s883_s19, %s1060_s19   ;;  %s826_s18 = sphi %s881_s18, %s1059_s18  }
   0x9   : > { %s34_s26 = sadd.s32 1, %s842_s22  ;;  %s132_s27 = sadd.s32 1, %s834_s20 }
   0xa   : > { %p36_p0 = scmp.ge.s32.totalorder %s34_s26, 2  ;;  %p142_p1 = scmp.ne.s32.totalorder %s834_s20, %s830_s19 }
   0xb   : > { %p143_p2 = scmp.eq.s32.totalorder %s633_s24, 1  ;;  %p148_p3 = scmp.ne.s32.totalorder %s830_s19, %s826_s18 }
   0xc   : > { %s1065_s26 = smov (%p36_p0, %s34_s26), 0  ;;  %p149_p5 = scmp.eq.s32.totalorder %s634_s25, 1 }
   0xd   : > { %p921_p4 = por %p143_p2, %p142_p1  ;;  %s129_s29 = ssub.s32 %s842_s22, %s1065_s26 }
   0xe   : > { %p637_p6 = scmp.ge.s32.totalorder %s846_s23, 1  ;;  %p130_p7 = scmp.eq.s32.totalorder %s129_s29, 0 }
   0xf   : > { %p928_p8 = por %p149_p5, %p148_p3  ;;  %p215_p9 = scmp.lt.s32.totalorder %s846_s23, 3 }
  0x10   : > { %s934_s6 = scalar_select %p130_p7, %s834_s20, %s132_s27  }
  0x11   : > { %p216_p10 = pnand %p637_p6, %p215_p9 }
  0x12   : > { %p253_p11 = scmp.lt.s32.totalorder (!%p216_p10), %s838_s21, 1  ;;  %s1058_s0 = sld [smem:[#allocation8_spill]] (!%p216_p10) }
  0x13   : > { %219 = sbr.rel (%p216_p10) target bundleno = 347 (0x15b), region = 36  ;;  %s665_s17 = sshll.u32 (!%p216_p10), %s838_s21, 5 }
  0x14   : > { %s503_s27 = scalar_lea.hbm (!%p216_p10), %s1053_s4, %s665_s17 }
  0x15   : > { %s506_s7 = sshll.u32 (!%p216_p10), %s503_s27, 4  ;;  %s756_s27 = scalar_lea.hbm (!%p216_p10), %s1053_s4, 64  ;;  %s507_s7 = int_to_ptr.hbm [resolvable:$true] %s506_s7 }
  0x18   : > { %v278_v0 = vld [vmem:[%s1051_s2 + $0x8] sm:$0xff]  ;;  %v848_v1 = vmov 0   ;;  %s254_s9 = scalar_select %p253_p11, %s838_s21, 1  ;;  %v277_v3 = vld [vmem:[%s1051_s2] sm:$0xff]  ;;  %vm300_vm0 = vcmask 1043456   ;;  %vm293_vm1 = vcmask 31744  }
  0x19   : > { %735 = vset.pattern.permute.xlu0 %v848_v1  ;;  %v275_v4 = vld [vmem:[%s1050_s1] sm:$0xff]  ;;  %v276_v7 = vld [vmem:[%s1050_s1 + $0x8] sm:$0xff]  ;;  %vm367_vm6 = vcmask 130048   ;;  %v365_v28 = vld [vmem:[%s1052_s3 + $0x10] sm:$0xff] }
  0x1a   : > { %286 = vperm.xlu0 %735, %v278_v0   ;;  %s664_s10 = sshll.u32 %s254_s9, 3  ;;  %v364_v25 = vld [vmem:[%s1052_s3 + $0x8] sm:$0xff]  ;;  %v363_v27 = vld [vmem:[%s1052_s3] sm:$0xff]  ;;  %v366_v29 = vld [vmem:[%s1052_s3 + $0x18] sm:$0xff] }
  0x1b   : > { %s260_s13 = scalar_lea.vmem %s1058_s0, %s664_s10  ;;  %s520_s10 = scalar_lea.hbm %s1054_s5, %s665_s17 }
  0x1c   : > { %v274_v2 = vld [vmem:[%s260_s13] sm:$0xff]  ;;  %s974_s13 = sand.u32 1, %s830_s19   ;;  %s523_s11 = sshll.u32 %s520_s10, 4  ;;  %s999_s11 = int_to_ptr.hbm [resolvable:$true] %s523_s11 }
  0x1d   : > { %290 = vst [vmem:[#allocation1] ss:$2 sm:$0xff] %v274_v2  ;;  %s638_s14 = sshll.u32 %s974_s13, 5  ;;  %s487_s12 = scalar_lea.sflag [#allocation3], %s974_s13 }
  0x1e   : > { %s977_s15 = scalar_lea.vmem [#allocation2], %s638_s14  ;;  %s980_s16 = scalar_lea.vmem [#allocation4], %s638_s14 }
  0x1f   : > { %s504_s29 = sshll.u32 %s977_s15, 4  ;;  %s521_s21 = sshll.u32 %s980_s16, 4  ;;  %s505_s29 = int_to_ptr.vmem [resolvable:$true] %s504_s29  ;;  %s997_s21 = int_to_ptr.vmem [resolvable:$true] %s521_s21 }
  0x20   : > { %s750_s14 = sshra.s32 %s507_s7, 4  ;;  %s751_s14 = int_to_ptr.hbm [resolvable:$true] %s750_s14 }
  0x21   : > { %s752_s17 = scalar_lea.hbm %s751_s14, 32  ;;  %p757_p1 = scmp.lt.s32.totalorder %s751_s14, %s1053_s4 }
  0x22   : > { %281 = vperm.xlu0 %735, %v277_v3   ;;  %p753_p12 = scmp.ne.s32.totalorder %s751_s14, %s752_s17  ;;  %p758_p2 = scmp.lt.s32.totalorder %s756_s27, %s752_s17 }
  0x24   : > { %v291_v5 = vld.sshfl [vmem:[#allocation1] sm:$0xff pattern:$0x75316420]  ;;  %v292_v6 = vld.sshfl [vmem:[#allocation1 + $0x8] sm:$0xff pattern:$0x75316420]  ;;  %p754_p13 = pnand %p753_p12, %p921_p4  ;;  %p759_p3 = por %p758_p2, %p757_p1 }
  0x25   : > { %642 = vmatpush.msk.msra.mxu0 %vm300_vm0, %v291_v5  ;;  %645 = vmatpush.msk.msra.mxu1 %vm300_vm0, %v292_v6 }
  0x26   : > { %643 = vmatmul.msk.f32.vlgmr.msra.gmra.mxu0 %vm293_vm1, %v275_v4  ;;  %646 = vmatmul.msk.f32.vlgmr.msra.gmra.mxu1 %vm293_vm1, %v275_v4  ;;  %p755_p0 = pneg %p754_p13 }
  0x28   : > { %p760_p5 = pnand %p759_p3, %p755_p0 }
  0x2e   : > { %644 = vmatmul.msk.f32.gmra.mxu0 %vm293_vm1, %v276_v7  ;;  %647 = vmatmul.msk.f32.gmra.mxu1 %vm293_vm1, %v276_v7 }
  0x8c   : > { %v287_v8 = vpop.permute.xlu0 %286 }
  0x94   : > { %v282_v11 = vpop.permute.xlu0 %281 }
  0xa3   : > { %v322_v9 = vpop.f32.mrf.mxu0  ;;  %v345_v10 = vpop.f32.mrf.mxu1 }
  0xa4   : > { %v323_v12 = vadd.f32 %v322_v9, %v282_v11  ;;  %v346_v13 = vadd.f32 %v345_v10, %v282_v11 }
  0xa6   : > { %v355_v18 = vmul.f32 0.2, %v323_v12  ;;  %vm351_vm4 = vcmp.ge.f32.partialorder %v323_v12, 0.0  ;;  %v356_v21 = vmul.f32 0.2, %v346_v13  ;;  %vm352_vm5 = vcmp.ge.f32.partialorder %v346_v13, 0.0 }
  0xa8   : > { %v359_v24 = vsel %vm351_vm4, %v323_v12, %v355_v18  ;;  %v360_v26 = vsel %vm352_vm5, %v346_v13, %v356_v21 }
  0xab   : > { %v325_v14 = vpop.f32.mrf.mxu0  ;;  %v348_v15 = vpop.f32.mrf.mxu1 }
  0xac   : > { %v326_v16 = vadd.f32 %v325_v14, %v287_v8  ;;  %v349_v17 = vadd.f32 %v348_v15, %v287_v8 }
  0xae   : > { %vm353_vm2 = vcmp.ge.f32.partialorder %v326_v16, 0.0  ;;  %v357_v19 = vmul.f32 0.2, %v326_v16  ;;  %vm354_vm3 = vcmp.ge.f32.partialorder %v349_v17, 0.0  ;;  %v358_v20 = vmul.f32 0.2, %v349_v17 }
  0xb0   : > { %v361_v22 = vsel %vm353_vm2, %v326_v16, %v357_v19  ;;  %v362_v23 = vsel %vm354_vm3, %v349_v17, %v358_v20 }
  0xb1   : > { %394 = vmatpush.msrb.mxu0 %v361_v22  ;;  %667 = vmatpush.msra.mxu2 %v361_v22 }
  0xb2   : > { %423 = vmatpush.msrb.mxu1 %v362_v23  ;;  %669 = vmatpush.msra.mxu3 %v362_v23 }
  0xb3   : > { %395 = vmatpush.msrb.mxu0 %v359_v24  ;;  %668 = vmatpush.msra.mxu2 %v359_v24 }
  0xb4   : > { %424 = vmatpush.msrb.mxu1 %v360_v26  ;;  %670 = vmatpush.msra.mxu3 %v360_v26 }
  0xb5   : > { %649 = vmatmul.msk.f32.vlgmr.msra.gmra.mxu2 %vm367_vm6, %v364_v25  ;;  %653 = vmatmul.msk.f32.vlgmr.msra.gmra.mxu3 %vm367_vm6, %v364_v25 }
  0xb6   : > { %648 = vmatmul.msk.f32.vlgmr.msrb.gmra.mxu0 %vm367_vm6, %v363_v27  ;;  %652 = vmatmul.msk.f32.vlgmr.msrb.gmra.mxu1 %vm367_vm6, %v363_v27 }
  0xbd   : > { %650 = vmatmul.msk.f32.gmra.mxu2 %vm367_vm6, %v365_v28  ;;  %654 = vmatmul.msk.f32.gmra.mxu3 %vm367_vm6, %v365_v28 }
  0xc5   : > { %651 = vmatmul.msk.f32.gmra.mxu2 %vm367_vm6, %v366_v29  ;;  %655 = vmatmul.msk.f32.gmra.mxu3 %vm367_vm6, %v366_v29 }
 0x133   : > { %v397_v30 = vpop.f32.mrf.mxu0  ;;  %v426_v31 = vpop.f32.mrf.mxu1 }
 0x134   : > { %v442_v32 = vmul.f32 %v397_v30, %v397_v30  ;;  %v450_v33 = vadd.f32 %v426_v31, %v397_v30  ;;  %v454_v34 = vmul.f32 %v426_v31, %v426_v31 }
 0x136   : > { %v458_v35 = vadd.f32 %v454_v34, %v442_v32  ;;  %470 = vst [vmem:[%s977_s15] sm:$0xff] %v450_v33 }
 0x138   : > { %v400_v36 = vpop.f32.mrf.mxu2  ;;  %v429_v37 = vpop.f32.mrf.mxu3  ;;  %482 = vst [vmem:[%s980_s16] sm:$0xff] %v458_v35 }
 0x139   : > { %v443_v38 = vmul.f32 %v400_v36, %v400_v36  ;;  %v451_v39 = vadd.f32 %v429_v37, %v400_v36  ;;  %v455_v40 = vmul.f32 %v429_v37, %v429_v37 }
 0x13b   : > { %v459_v41 = vadd.f32 %v455_v40, %v443_v38  ;;  %471 = vst [vmem:[%s977_s15 + $0x8] sm:$0xff] %v451_v39 }
 0x13d   : > { %483 = vst [vmem:[%s980_s16 + $0x8] sm:$0xff] %v459_v41 }
 0x140   : > { %v403_v42 = vpop.f32.mrf.mxu2  ;;  %v432_v43 = vpop.f32.mrf.mxu3 }
 0x141   : > { %v444_v44 = vmul.f32 %v403_v42, %v403_v42  ;;  %v452_v45 = vadd.f32 %v432_v43, %v403_v42  ;;  %v456_v46 = vmul.f32 %v432_v43, %v432_v43 }
 0x143   : > { %v460_v47 = vadd.f32 %v456_v46, %v444_v44  ;;  %472 = vst [vmem:[%s977_s15 + $0x10] sm:$0xff] %v452_v45 }
 0x145   : > { %484 = vst [vmem:[%s980_s16 + $0x10] sm:$0xff] %v460_v47 }
 0x148   : > { %v406_v48 = vpop.f32.mrf.mxu2  ;;  %v435_v49 = vpop.f32.mrf.mxu3 }
 0x149   : > { %v445_v50 = vmul.f32 %v406_v48, %v406_v48  ;;  %v453_v51 = vadd.f32 %v435_v49, %v406_v48  ;;  %v457_v52 = vmul.f32 %v435_v49, %v435_v49 }
 0x14b   : > { %v461_v53 = vadd.f32 %v457_v52, %v445_v50  ;;  %473 = vst [vmem:[%s977_s15 + $0x18] sm:$0xff] %v453_v51 }
 0x14c   : > { %763 = shalt.err (!%p760_p5)
}
 0x14d   : > { %s849_s15 = smov 128   ;;  %s850_s10 = smov 8   ;;  %485 = vst [vmem:[%s980_s16 + $0x18] sm:$0xff] %v461_v53 }
 0x14e   : > { %671 = dma.vmem_to_hbm [thread:$0]  (%p921_p4), %s505_s29, 512, %s507_s7, %s487_s12, %s849_s15, %s849_s15, %s850_s10  }
 0x14f   : > { %s492_s24 = scalar_lea.sflag [#allocation5], %s974_s13  ;;  %s778_s25 = sshra.s32 %s999_s11, 4  ;;  %s779_s25 = int_to_ptr.hbm [resolvable:$true] %s778_s25 }
 0x150   : > { %s780_s0 = scalar_lea.hbm %s779_s25, 32  ;;  %s784_s27 = scalar_lea.hbm %s1054_s5, 64 }
 0x151   : > { %p781_p6 = scmp.ne.s32.totalorder %s779_s25, %s780_s0  ;;  %p785_p10 = scmp.lt.s32.totalorder %s779_s25, %s1054_s5 }
 0x152   : > { %p786_p11 = scmp.lt.s32.totalorder %s784_s27, %s780_s0 }
 0x153   : > { %p782_p7 = pnand %p781_p6, %p921_p4 }
 0x154   : > { %p787_p12 = por %p786_p11, %p785_p10 }
 0x155   : > { %p783_p9 = pneg %p782_p7 }
 0x157   : > { %p788_p13 = pnand %p787_p12, %p783_p9 }
 0x159   : > { %791 = shalt.err (!%p788_p13)
}
 0x15a   : > { %672 = dma.vmem_to_hbm [thread:$0]  (%p921_p4), %s997_s21, 512, %s999_s11, %s492_s24, %s849_s15, %s849_s15, %s850_s10  }
 0x15b PF: > { %p682_p0 = scmp.ge.s32.totalorder %s846_s23, 2  ;;  %s538_s13 = sand.u32 1, %s826_s18  }
 0x15c   : > { %s539_s16 = scalar_lea.sflag [#allocation3], %s538_s13 }
 0x15d   : > { %p676_p1 = pnand %p682_p0, %p928_p8 }
 0x15f   : > { %p677_p2 = pneg %p676_p1 }
 0x161   : > { %817 = dma.done.wait (%p677_p2), %s539_s16, 512  }
 0x162   : > { %819 = vsyncadd (%p677_p2), %s539_s16, 4294966784  ;;  %s549_s0 = scalar_lea.sflag [#allocation5], %s538_s13 }
 0x163   : > { %821 = dma.done.wait (%p677_p2), %s549_s0, 512  }
 0x164   : > { %823 = vsyncadd (%p677_p2), %s549_s0, 4294966784  ;;  %s22_s23 = sadd.s32 1, %s846_s23   ;;  %s1059_s18 = smov %s830_s19 }
 0x165   : > { %p19_p3 = scmp.ge.s32.totalorder %s22_s23, 4   ;;  %s1060_s19 = smov %s834_s20 }
 0x166   : > { %s1061_s20 = smov %s934_s6  ;;  %s1062_s21 = smov %s842_s22 }
 0x167   : > { %s1063_s22 = smov %s1065_s26  ;;  %21 = sbr.rel (!%p19_p3) target bundleno = 8 (0x8), region = 92 }
 0x16c   :  { %555 = vsyncpa [#allocation3], 1 }
 0x16d   :  { %557 = vsyncpa [#allocation3 + $0x1], 1 }
 0x16e   :  { %558 = vsyncpa [#allocation5], 1 }
 0x16f   :  { %560 = vsyncpa [#allocation5 + $0x1], 1 }

</bundles_post_ra>
